<compile_context>
chip_gen: v5e
topology: v5e:2x2
jax: 0.10.0
libtpu: 0.0.40
codegen_flags: <defaults>
</compile_context>

<pallas_src>
import math
import jax
import jax.numpy as jnp
from jax.experimental import pallas as pl
from jax.experimental.pallas import tpu as pltpu


# ---------------------------------------------------------------------------
# Kernels
# ---------------------------------------------------------------------------
def _critic_kernel_scalar_out(s_ref, a_ref, w1s_ref, w1a_ref, b1_ref,
                              w2_ref, b2_ref, w3_ref, b3_ref, o_ref):
    """Fused 3-layer MLP for output_size == 1, lane-dense (1, TB) output.

    s_ref/a_ref : (TB, Ds) / (TB, Da) f32 activation tiles (pipelined).
    w1s/w1a/w2  : compute-dtype weights (VMEM-resident, constant index_map).
    b1/b2       : (1, H) f32;  w3_ref: (8, H) f32 (row replicated 8x);
    b3_ref      : (1,) f32 scalar in SMEM.
    o_ref       : (1, TB) f32 lane-major output row for this batch tile.
    """
    cdt = w1s_ref.dtype
    # ---- layer 1 (concat fused as two MXU matmuls) + ReLU -----------------
    h1 = jnp.dot(s_ref[...].astype(cdt), w1s_ref[...],
                 preferred_element_type=jnp.float32)
    h1 += jnp.dot(a_ref[...].astype(cdt), w1a_ref[...],
                  preferred_element_type=jnp.float32)
    h1 = jnp.maximum(h1 + b1_ref[...], 0.0)                      # f32 (TB, H)

    # ---- layer 2 + ReLU ---------------------------------------------------
    h2 = jnp.dot(h1.astype(w2_ref.dtype), w2_ref[...],
                 preferred_element_type=jnp.float32)
    h2 = jnp.maximum(h2 + b2_ref[...], 0.0)                      # f32 (TB, H)

    # ---- layer 3 (H -> 1), computed transposed so the output is lane-dense:
    #   (8, H) @ (TB, H)^T -> (8, TB); all 8 rows identical (w3 replicated).
    res = jax.lax.dot_general(
        w3_ref[...], h2,
        dimension_numbers=(((1,), (1,)), ((), ())),
        preferred_element_type=jnp.float32)                      # (8, TB)
    o_ref[...] = (res[0:1, :] + b3_ref[0]).astype(o_ref.dtype)   # (1, TB)


def _critic_kernel_mat_out(s_ref, a_ref, w1s_ref, w1a_ref, b1_ref,
                           w2_ref, b2_ref, w3_ref, b3_ref, o_ref):
    """General fused 3-layer MLP (output_size > 1 -> MXU for layer 3)."""
    cdt = w1s_ref.dtype
    h1 = jnp.dot(s_ref[...].astype(cdt), w1s_ref[...],
                 preferred_element_type=jnp.float32)
    h1 += jnp.dot(a_ref[...].astype(cdt), w1a_ref[...],
                  preferred_element_type=jnp.float32)
    h1 = jnp.maximum(h1 + b1_ref[...], 0.0)

    h2 = jnp.dot(h1.astype(w2_ref.dtype), w2_ref[...],
                 preferred_element_type=jnp.float32)
    h2 = jnp.maximum(h2 + b2_ref[...], 0.0)

    out = jnp.dot(h2, w3_ref[...],
                  preferred_element_type=jnp.float32) + b3_ref[...]
    o_ref[...] = out.astype(o_ref.dtype)


# ---------------------------------------------------------------------------
# Host-side parameter prep (run ONCE per parameter update, not per call)
# ---------------------------------------------------------------------------
def prepare_critic_params(params, state_dim, *, compute_dtype=jnp.float32):
    """Split W1 (fuses the concat), reshape biases, cast layer-1/2 weights.

    params: (w1, b1, w2, b2, w3, b3) with w* in (in, out) layout.
    compute_dtype: jnp.float32 (default, recommended on v5e) or jnp.bfloat16
        (layer-1/2 weights only; activations stay f32, MXU accumulates f32,
        w3/b3 stay f32).
    """
    w1, b1, w2, b2, w3, b3 = params
    hidden = w1.shape[1]
    out_size = w3.shape[1]
    assert w1.shape[0] > state_dim, "input_size must exceed state_dim"

    w1s = jnp.asarray(w1[:state_dim], compute_dtype)
    w1a = jnp.asarray(w1[state_dim:], compute_dtype)
    b1f = jnp.asarray(b1, jnp.float32).reshape(1, hidden)
    w2c = jnp.asarray(w2, compute_dtype)
    b2f = jnp.asarray(b2, jnp.float32).reshape(1, hidden)

    if out_size == 1:
        # Lane-major w3 row replicated to 8 sublanes: layer 3 runs as an
        # (8,H) @ (TB,H)^T matmul whose (1, TB) row-0 result is lane-dense.
        w3k = jnp.tile(jnp.asarray(w3, jnp.float32).reshape(1, hidden), (8, 1))
        b3k = jnp.asarray(b3, jnp.float32).reshape(1)          # SMEM scalar
    else:
        w3k = jnp.asarray(w3, jnp.float32)
        b3k = jnp.asarray(b3, jnp.float32).reshape(1, out_size)

    return dict(w1s=w1s, w1a=w1a, b1=b1f, w2=w2c, b2=b2f, w3=w3k, b3=b3k,
                state_dim=state_dim, hidden=hidden, out_size=out_size)


# ---------------------------------------------------------------------------
# Tile / grid selection
# ---------------------------------------------------------------------------
def _round_up(x, m):
    return ((x + m - 1) // m) * m


def _choose_batch_tile(batch, tile_b, min_grid_steps=2):
    """Batch tile: multiple of 8, <= tile_b, and small enough that the grid
    has at least `min_grid_steps` steps (so "parallel" can use both TCs on
    v7x).  Ragged last tiles are handled by Pallas block padding."""
    padded = _round_up(batch, 8)
    tb = min(padded, max(8, (tile_b // 8) * 8))
    if min_grid_steps > 1:
        tb = min(tb, _round_up(pl.cdiv(padded, min_grid_steps), 8))
    return max(8, tb)


# ---------------------------------------------------------------------------
# Forward pass
# ---------------------------------------------------------------------------
def critic_forward(state, action, prep, *, tile_b=4096, min_grid_steps=2):
    """Critic forward pass using pre-prepared params (see prepare_critic_params).

    state : (B, Ds) f32, action : (B, Da) f32.  Returns (B, output_size) f32.
    """
    batch, state_dim = state.shape
    action_dim = action.shape[1]
    assert state_dim == prep["state_dim"]
    assert action_dim == prep["w1a"].shape[0]
    out_size = prep["out_size"]

    tb = _choose_batch_tile(batch, tile_b, min_grid_steps)
    num_tiles = pl.cdiv(batch, tb)
    grid = (num_tiles,)
    # VMEM: ~2 * tb * (Ds+Da+1) * 4B double-buffered activations + tiny
    # weights -> far below the scoped default for these shapes; no
    # vmem_limit_bytes override needed.

    def const_spec(arr):               # VMEM-resident across the whole grid
        return pl.BlockSpec(arr.shape, lambda i: (0, 0))

    def row_spec(feat):                # pipelined batch tiles
        return pl.BlockSpec((tb, feat), lambda i: (i, 0))

    if out_size == 1:
        kernel = _critic_kernel_scalar_out
        # Lane-dense output: one (1, tb) row per grid step; reshape on host.
        out_shape = jax.ShapeDtypeStruct((num_tiles, 1, tb), jnp.float32)
        out_spec = pl.BlockSpec((None, 1, tb), lambda i: (i, 0, 0))
        b3_spec = pl.BlockSpec(memory_space=pltpu.MemorySpace.SMEM)
    else:
        kernel = _critic_kernel_mat_out
        out_shape = jax.ShapeDtypeStruct((batch, out_size), jnp.float32)
        out_spec = pl.BlockSpec((tb, out_size), lambda i: (i, 0))
        b3_spec = const_spec(prep["b3"])

    out = pl.pallas_call(
        kernel,
        out_shape=out_shape,
        grid=grid,
        in_specs=[
            row_spec(state_dim),          # state tile (pipelined)
            row_spec(action_dim),         # action tile (pipelined)
            const_spec(prep["w1s"]), const_spec(prep["w1a"]),
            const_spec(prep["b1"]),
            const_spec(prep["w2"]), const_spec(prep["b2"]),
            const_spec(prep["w3"]), b3_spec,
        ],
        out_specs=out_spec,
        compiler_params=pltpu.CompilerParams(
            dimension_semantics=("parallel",)),   # 2-TC sharding on v7x
    )(state, action, prep["w1s"], prep["w1a"], prep["b1"],
      prep["w2"], prep["b2"], prep["w3"], prep["b3"])

    if out_size == 1:
        # (num_tiles, 1, tb) lane-major rows -> (B, 1); padded rows dropped.
        out = out.reshape(-1)[:batch].reshape(batch, 1)
    return out


# ---------------------------------------------------------------------------
# Init + pure-JAX reference
# ---------------------------------------------------------------------------
def init_critic_params(key, input_size, hidden_size, output_size):
    """Mirror nn.Linear init: U(-1/sqrt(fan_in), 1/sqrt(fan_in))."""
    ks = jax.random.split(key, 6)

    def linear(kw, kb, fan_in, fan_out):
        bound = 1.0 / math.sqrt(fan_in)
        w = jax.random.uniform(kw, (fan_in, fan_out), jnp.float32, -bound, bound)
        b = jax.random.uniform(kb, (1, fan_out), jnp.float32, -bound, bound)
        return w, b

    w1, b1 = linear(ks[0], ks[1], input_size, hidden_size)
    w2, b2 = linear(ks[2], ks[3], hidden_size, hidden_size)
    w3, b3 = linear(ks[4], ks[5], hidden_size, output_size)
    return (w1, b1, w2, b2, w3, b3)


def critic_reference(state, action, params):
    w1, b1, w2, b2, w3, b3 = params
    x = jnp.concatenate([state, action], axis=1)
    x = jnp.maximum(x @ w1 + b1, 0.0)
    x = jnp.maximum(x @ w2 + b2, 0.0)
    return x @ w3 + b3


# ---------------------------------------------------------------------------
# Demo / correctness check
# ---------------------------------------------------------------------------
if __name__ == "__main__":
    batch, state_dim, action_dim = 256, 24, 8
    input_size = state_dim + action_dim          # 32
    hidden_size, output_size = 32, 1

    key = jax.random.PRNGKey(0)
    k_state, k_action, k_params = jax.random.split(key, 3)

    state = jax.random.normal(k_state, (batch, state_dim), jnp.float32)
    action = jax.random.normal(k_action, (batch, action_dim), jnp.float32)
    params = init_critic_params(k_params, input_size, hidden_size, output_size)
    ref = critic_reference(state, action, params)

    # f32 path, prepared params reused across calls; grid of 2 batch tiles.
    prep = prepare_critic_params(params, state_dim)
    out = critic_forward(state, action, prep)
    jax.block_until_ready(out)
    assert out.shape == (batch, output_size)
    assert jnp.allclose(out, ref, atol=1e-5, rtol=1e-5)

    # Ragged batch (not a multiple of 8) -> exercises padded last tile.
    out_r = critic_forward(state[:100], action[:100], prep)
    jax.block_until_ready(out_r)
    assert out_r.shape == (100, output_size)
    assert jnp.allclose(out_r, ref[:100], atol=1e-5, rtol=1e-5)

    # bf16 layer-1/2 weights (activations stay f32 in HBM, f32 accumulation).
    prep_bf16 = prepare_critic_params(params, state_dim,
                                      compute_dtype=jnp.bfloat16)
    out_bf16 = critic_forward(state, action, prep_bf16)
    jax.block_until_ready(out_bf16)
    assert jnp.allclose(out_bf16, ref, atol=5e-2, rtol=5e-2)

    # output_size > 1 exercises the MXU layer-3 path.
    params4 = init_critic_params(k_params, input_size, hidden_size, 4)
    prep4 = prepare_critic_params(params4, state_dim)
    out4 = critic_forward(state, action, prep4)
    jax.block_until_ready(out4)
    assert out4.shape == (batch, 4)
    assert jnp.allclose(out4, critic_reference(state, action, params4),
                        atol=1e-5, rtol=1e-5)

    print("KERNEL_OK")
</pallas_src>

<mosaic_0001>
module attributes {stable_mosaic.version = 11 : i64} {
  func.func @_critic_kernel_scalar_out(%arg0: i32, %arg1: memref<128x24xf32, #tpu.memory_space<vmem>>, %arg2: memref<128x8xf32, #tpu.memory_space<vmem>>, %arg3: memref<24x32xf32, #tpu.memory_space<vmem>>, %arg4: memref<8x32xf32, #tpu.memory_space<vmem>>, %arg5: memref<1x32xf32, #tpu.memory_space<vmem>>, %arg6: memref<32x32xf32, #tpu.memory_space<vmem>>, %arg7: memref<1x32xf32, #tpu.memory_space<vmem>>, %arg8: memref<8x32xf32, #tpu.memory_space<vmem>>, %arg9: memref<1xf32, #tpu.memory_space<smem>>, %arg10: memref<1x1x128xf32, #tpu.memory_space<vmem>>) attributes {dimension_semantics = [#tpu.dimension_semantics<parallel>], iteration_bounds = array<i64: 2>, scalar_prefetch = 0 : i64, scratch_operands = 0 : i64, tpu.core_type = #tpu.core_type<tc>, window_params = [{transform_indices = @transform_0, window_bounds = array<i64: 128, 24>}, {transform_indices = @transform_1, window_bounds = array<i64: 128, 8>}, {pipeline_mode = #tpu.pipeline_mode<synchronous>, transform_indices = @transform_2, window_bounds = array<i64: 24, 32>}, {pipeline_mode = #tpu.pipeline_mode<synchronous>, transform_indices = @transform_3, window_bounds = array<i64: 8, 32>}, {pipeline_mode = #tpu.pipeline_mode<synchronous>, transform_indices = @transform_4, window_bounds = array<i64: 1, 32>}, {pipeline_mode = #tpu.pipeline_mode<synchronous>, transform_indices = @transform_5, window_bounds = array<i64: 32, 32>}, {pipeline_mode = #tpu.pipeline_mode<synchronous>, transform_indices = @transform_6, window_bounds = array<i64: 1, 32>}, {pipeline_mode = #tpu.pipeline_mode<synchronous>, transform_indices = @transform_7, window_bounds = array<i64: 8, 32>}, {transform_indices = @transform_8, window_bounds = array<i64: 1>}, {transform_indices = @transform_9, window_bounds = array<i64: 1, 1, 128>}]} {
    %c0 = arith.constant 0 : index
    %c0_0 = arith.constant 0 : index
    %0 = vector.load %arg1[%c0, %c0_0] : memref<128x24xf32, #tpu.memory_space<vmem>>, vector<128x24xf32>
    %c0_1 = arith.constant 0 : index
    %c0_2 = arith.constant 0 : index
    %1 = vector.load %arg3[%c0_1, %c0_2] : memref<24x32xf32, #tpu.memory_space<vmem>>, vector<24x32xf32>
    %cst = arith.constant dense<0.000000e+00> : vector<128x32xf32>
    %2 = tpu.matmul %0, %1, %cst {dimension_numbers = #tpu.dot_dimension_numbers<[1], [0], [0], [1], [0, 0, 1, 1], [], []>} : vector<128x24xf32>, vector<24x32xf32>, vector<128x32xf32> -> vector<128x32xf32>
    %c0_3 = arith.constant 0 : index
    %c0_4 = arith.constant 0 : index
    %3 = vector.load %arg2[%c0_3, %c0_4] : memref<128x8xf32, #tpu.memory_space<vmem>>, vector<128x8xf32>
    %c0_5 = arith.constant 0 : index
    %c0_6 = arith.constant 0 : index
    %4 = vector.load %arg4[%c0_5, %c0_6] : memref<8x32xf32, #tpu.memory_space<vmem>>, vector<8x32xf32>
    %cst_7 = arith.constant dense<0.000000e+00> : vector<128x32xf32>
    %5 = tpu.matmul %3, %4, %cst_7 {dimension_numbers = #tpu.dot_dimension_numbers<[1], [0], [0], [1], [0, 0, 1, 1], [], []>} : vector<128x8xf32>, vector<8x32xf32>, vector<128x32xf32> -> vector<128x32xf32>
    %6 = arith.addf %2, %5 : vector<128x32xf32>
    %c0_8 = arith.constant 0 : index
    %c0_9 = arith.constant 0 : index
    %7 = vector.load %arg5[%c0_8, %c0_9] : memref<1x32xf32, #tpu.memory_space<vmem>>, vector<1x32xf32>
    %8 = vector.broadcast %7 : vector<1x32xf32> to vector<128x32xf32>
    %9 = arith.addf %6, %8 : vector<128x32xf32>
    %cst_10 = arith.constant 0.000000e+00 : f32
    %10 = vector.broadcast %cst_10 : f32 to vector<128x32xf32>
    %11 = arith.maximumf %9, %10 : vector<128x32xf32>
    %c0_11 = arith.constant 0 : index
    %c0_12 = arith.constant 0 : index
    %12 = vector.load %arg6[%c0_11, %c0_12] : memref<32x32xf32, #tpu.memory_space<vmem>>, vector<32x32xf32>
    %cst_13 = arith.constant dense<0.000000e+00> : vector<128x32xf32>
    %13 = tpu.matmul %11, %12, %cst_13 {dimension_numbers = #tpu.dot_dimension_numbers<[1], [0], [0], [1], [0, 0, 1, 1], [], []>} : vector<128x32xf32>, vector<32x32xf32>, vector<128x32xf32> -> vector<128x32xf32>
    %c0_14 = arith.constant 0 : index
    %c0_15 = arith.constant 0 : index
    %14 = vector.load %arg7[%c0_14, %c0_15] : memref<1x32xf32, #tpu.memory_space<vmem>>, vector<1x32xf32>
    %15 = vector.broadcast %14 : vector<1x32xf32> to vector<128x32xf32>
    %16 = arith.addf %13, %15 : vector<128x32xf32>
    %cst_16 = arith.constant 0.000000e+00 : f32
    %17 = vector.broadcast %cst_16 : f32 to vector<128x32xf32>
    %18 = arith.maximumf %16, %17 : vector<128x32xf32>
    %c0_17 = arith.constant 0 : index
    %c0_18 = arith.constant 0 : index
    %19 = vector.load %arg8[%c0_17, %c0_18] : memref<8x32xf32, #tpu.memory_space<vmem>>, vector<8x32xf32>
    %cst_19 = arith.constant dense<0.000000e+00> : vector<8x128xf32>
    %20 = tpu.matmul %19, %18, %cst_19 {dimension_numbers = #tpu.dot_dimension_numbers<[1], [1], [0], [0], [0, 0, 1, 0], [], []>} : vector<8x32xf32>, vector<128x32xf32>, vector<8x128xf32> -> vector<8x128xf32>
    %21 = vector.extract_strided_slice %20 {offsets = [0, 0], sizes = [1, 128], strides = [1, 1]} : vector<8x128xf32> to vector<1x128xf32>
    %c0_20 = arith.constant 0 : index
    %22 = memref.load %arg9[%c0_20] : memref<1xf32, #tpu.memory_space<smem>>
    %23 = vector.broadcast %22 : f32 to vector<1x128xf32>
    %24 = arith.addf %21, %23 : vector<1x128xf32>
    %c0_21 = arith.constant 0 : index
    %c0_22 = arith.constant 0 : index
    %c0_23 = arith.constant 0 : index
    %25 = vector.load %arg10[%c0_21, %c0_22, %c0_23] : memref<1x1x128xf32, #tpu.memory_space<vmem>>, vector<1x1x128xf32>
    %26 = vector.shape_cast %25 : vector<1x1x128xf32> to vector<1x128xf32>
    %27 = vector.shape_cast %24 : vector<1x128xf32> to vector<1x1x128xf32>
    tpu.vector_store %arg10[%c0_21, %c0_22, %c0_23], %27 {strides = array<i32>} : memref<1x1x128xf32, #tpu.memory_space<vmem>>, vector<1x1x128xf32>,
    return
  }
  func.func @transform_0(%arg0: i32) -> (i32, i32) {
    %c0_i32 = arith.constant 0 : i32
    %c0_i32_0 = arith.constant 0 : i32
    return %arg0, %c0_i32 : i32, i32
  }
  func.func @transform_1(%arg0: i32) -> (i32, i32) {
    %c0_i32 = arith.constant 0 : i32
    %c0_i32_0 = arith.constant 0 : i32
    return %arg0, %c0_i32 : i32, i32
  }
  func.func @transform_2(%arg0: i32) -> (i32, i32) {
    %c0_i32 = arith.constant 0 : i32
    %c0_i32_0 = arith.constant 0 : i32
    %c0_i32_1 = arith.constant 0 : i32
    return %c0_i32, %c0_i32_0 : i32, i32
  }
  func.func @transform_3(%arg0: i32) -> (i32, i32) {
    %c0_i32 = arith.constant 0 : i32
    %c0_i32_0 = arith.constant 0 : i32
    %c0_i32_1 = arith.constant 0 : i32
    return %c0_i32, %c0_i32_0 : i32, i32
  }
  func.func @transform_4(%arg0: i32) -> (i32, i32) {
    %c0_i32 = arith.constant 0 : i32
    %c0_i32_0 = arith.constant 0 : i32
    %c0_i32_1 = arith.constant 0 : i32
    return %c0_i32, %c0_i32_0 : i32, i32
  }
  func.func @transform_5(%arg0: i32) -> (i32, i32) {
    %c0_i32 = arith.constant 0 : i32
    %c0_i32_0 = arith.constant 0 : i32
    %c0_i32_1 = arith.constant 0 : i32
    return %c0_i32, %c0_i32_0 : i32, i32
  }
  func.func @transform_6(%arg0: i32) -> (i32, i32) {
    %c0_i32 = arith.constant 0 : i32
    %c0_i32_0 = arith.constant 0 : i32
    %c0_i32_1 = arith.constant 0 : i32
    return %c0_i32, %c0_i32_0 : i32, i32
  }
  func.func @transform_7(%arg0: i32) -> (i32, i32) {
    %c0_i32 = arith.constant 0 : i32
    %c0_i32_0 = arith.constant 0 : i32
    %c0_i32_1 = arith.constant 0 : i32
    return %c0_i32, %c0_i32_0 : i32, i32
  }
  func.func @transform_8(%arg0: i32) -> i32 {
    %c0_i32 = arith.constant 0 : i32
    %c0_i32_0 = arith.constant 0 : i32
    return %c0_i32 : i32
  }
  func.func @transform_9(%arg0: i32) -> (i32, i32, i32) {
    %c0_i32 = arith.constant 0 : i32
    %c0_i32_0 = arith.constant 0 : i32
    %c0_i32_1 = arith.constant 0 : i32
    return %arg0, %c0_i32, %c0_i32_0 : i32, i32, i32
  }
}

</mosaic_0001>

<bundles_post_ra>
// kernel: tpu_custom_call.1
= control target key start
LH: loop header
LB: loop body
LE: loop exit
PB: predicated region body
PF: predicated region fallthrough
CT: control target
= control target key end

     0   :  { %s1421_s0 = inlined_call_operand.vmem [shape: f32[256,24], index: 0, kind: input, shape index: {}]   ;;  %s1422_s1 = inlined_call_operand.vmem [shape: f32[256,8], index: 1, kind: input, shape index: {}]   ;;  %s1423_s2 = inlined_call_operand.vmem [shape: f32[24,32], index: 2, kind: input, shape index: {}]   ;;  %s1424_s3 = inlined_call_operand.vmem [shape: f32[8,32], index: 3, kind: input, shape index: {}]   ;;  %s1425_s4 = inlined_call_operand.vmem [shape: f32[1,32], index: 4, kind: input, shape index: {}]   ;;  %s1426_s5 = inlined_call_operand.vmem [shape: f32[32,32], index: 5, kind: input, shape index: {}]   ;;  %s1427_s6 = inlined_call_operand.vmem [shape: f32[1,32], index: 6, kind: input, shape index: {}]   ;;  %s1428_s7 = inlined_call_operand.vmem [shape: f32[8,32], index: 7, kind: input, shape index: {}]   ;;  %s1429_s8 = inlined_call_operand.<no memory space> [shape: f32[1], index: 8, kind: input, shape index: {}]   ;;  %s1430_s9 = inlined_call_operand.hbm [shape: f32[2,1,128], index: 9, kind: output, shape index: {}]  }
   0x1   :  { %14 = sst [smem:[#allocation2]] %s1429_s8 }
   0x2   :  { %15 = vsyncpa [#allocation4], 0 }
   0x3   :  { %17 = vsyncpa [#allocation4 + $0x1], 0  ;;  %s1182_s11 = smov 0   ;;  %s1184_s12 = smov 0  }
   0x4   :  { %s1186_s13 = smov 0   ;;  %s1188_s14 = smov 0  }
   0x5 LB: > { %s1203_s8 = sadd.s32 4294967295, %s1127_s14   ;;  %s949_s15 = sadd.s32 4294967294, %s1127_s14   ;;  %s1127_s14 = sphi %s1188_s14, %s1436_s14   ;;  %s1123_s13 = sphi %s1186_s13, %s1435_s13   ;;  %s1119_s12 = sphi %s1184_s12, %s1434_s12   ;;  %s1115_s11 = sphi %s1182_s11, %s1433_s11  }
   0x6   : > { %s1207_s16 = sadd.s32 1, %s1127_s14   ;;  %s229_s17 = sadd.s32 1, %s1123_s13 }
   0x7   : > { %s226_s18 = ssub.s32 %s1127_s14, %s1207_s16  ;;  %p239_p0 = scmp.ne.s32.totalorder %s1123_s13, %s1119_s12 }
   0x8   : > { %p227_p1 = scmp.eq.s32.totalorder %s226_s18, 0  ;;  %p240_p2 = scmp.eq.s32.totalorder %s1203_s8, 1 }
   0x9   : > { %p245_p3 = scmp.ne.s32.totalorder %s1119_s12, %s1115_s11  ;;  %p246_p4 = scmp.eq.s32.totalorder %s949_s15, 1 }
   0xa   : > { %s1218_s19 = scalar_select %p227_p1, %s1123_s13, %s229_s17  }
   0xb   : > { %p1220_p5 = por %p240_p2, %p239_p0  ;;  %p1224_p6 = por %p246_p4, %p245_p3 }
   0xc   : > { %p952_p7 = scmp.ge.s32.totalorder %s1127_s14, 1  ;;  %p303_p8 = scmp.lt.s32.totalorder %s1127_s14, 3 }
   0xe   : > { %p304_p9 = pnand %p952_p7, %p303_p8 }
   0xf   : > { %s953_s28 = sshll.u32 (!%p304_p9), %s1203_s8, 4  ;;  %s865_s26 = sld [smem:[#allocation2]] (!%p304_p9) }
  0x10   : > { %307 = sbr.rel (%p304_p9) target bundleno = 615 (0x267), region = 56  ;;  %p344_p10 = scmp.lt.s32.totalorder (!%p304_p9), %s953_s28, 31 }
  0x11   : > { %s341_s27 = sand.u32 (!%p304_p9), 1, %s1119_s12   ;;  %s878_s30 = scalar_lea.hbm (!%p304_p9), %s1430_s9, %s1203_s8 }
  0x12   : > { %s882_s17 = sshll.u32 (!%p304_p9), %s878_s30, 4  ;;  %s870_s22 = scalar_lea.sflag (!%p304_p9), [#allocation4], %s341_s27  ;;  %s883_s17 = int_to_ptr.hbm [resolvable:$true] %s882_s17 }
  0x13   : > { %s1085_s8 = scalar_lea.hbm (!%p304_p9), %s1430_s9, 2 }
  0x15   : > { %v373_v0 = vld [vmem:[%s1423_s2 + $0x10] sm:$0xff]  ;;  %v372_v1 = vld [vmem:[%s1423_s2 + $0x8] sm:$0xff]  ;;  %v390_v2 = vld [vmem:[%s1424_s3] sm:$0xff]  ;;  %s1438_s28 = smov (!%p344_p10, %s953_s28), 31  ;;  %vm391_vm0 = vcmask 64512   ;;  %vm505_vm1 = vcmask 195584  }
  0x16   : > { %567 = vmatpush.msra.mxu1 %v373_v0  ;;  %455 = vmatpush.msra.mxu0 %v390_v2  ;;  %v371_v3 = vld [vmem:[%s1423_s2] sm:$0xff]  ;;  %s954_s10 = sshll.u32 %s1438_s28, 3  ;;  %v658_v28 = vld [vmem:[%s1426_s5 + $0x18] sm:$0xff]  ;;  %v657_v31 = vld [vmem:[%s1426_s5 + $0x10] sm:$0xff]  ;;  %vm663_vm2 = vcmask 261120  }
  0x17   : > { %s1246_s18 = scalar_lea.vmem %s1422_s1, %s954_s10  ;;  %s1251_s24 = scalar_lea.vmem %s1421_s0, %s954_s10  ;;  %724 = vmatpush.msra.mxu2 %v658_v28  ;;  %v656_v32 = vld [vmem:[%s1426_s5 + $0x8] sm:$0xff]  ;;  %v655_v33 = vld [vmem:[%s1426_s5] sm:$0xff] }
  0x18   : > { %568 = vmatpush.msra.mxu1 %v372_v1  ;;  %v374_v4 = vld [vmem:[%s1246_s18] sm:$0xff]  ;;  %v375_v6 = vld [vmem:[%s1246_s18 + $0x8] sm:$0xff]  ;;  %v376_v8 = vld [vmem:[%s1246_s18 + $0x10] sm:$0xff]  ;;  %s342_s10 = scalar_lea.vmem [#allocation3], %s341_s27 }
  0x19   : > { %v355_v5 = vld [vmem:[%s1251_s24] sm:$0xff]  ;;  %957 = vmatmul.msk.f32.vlgmr.msra.gmra.mxu0 %vm391_vm0, %v374_v4  ;;  %v356_v7 = vld [vmem:[%s1251_s24 + $0x8] sm:$0xff]  ;;  %v357_v9 = vld [vmem:[%s1251_s24 + $0x10] sm:$0xff]  ;;  %725 = vmatpush.msra.mxu2 %v657_v31  ;;  %s880_s15 = sshll.u32 %s342_s10, 4  ;;  %s881_s15 = int_to_ptr.vmem [resolvable:$true] %s880_s15 }
  0x1a   : > { %569 = vmatpush.msra.mxu1 %v371_v3  ;;  %v377_v10 = vld [vmem:[%s1246_s18 + $0x18] sm:$0xff]  ;;  %v378_v12 = vld [vmem:[%s1246_s18 + $0x20] sm:$0xff]  ;;  %v379_v14 = vld [vmem:[%s1246_s18 + $0x28] sm:$0xff] }
  0x1b   : > { %973 = vmatmul.msk.f32.vlgmr.msra.gmra.mxu1 %vm505_vm1, %v355_v5  ;;  %v358_v11 = vld [vmem:[%s1251_s24 + $0x18] sm:$0xff]  ;;  %v359_v13 = vld [vmem:[%s1251_s24 + $0x20] sm:$0xff]  ;;  %v360_v15 = vld [vmem:[%s1251_s24 + $0x28] sm:$0xff]  ;;  %726 = vmatpush.msra.mxu2 %v656_v32 }
  0x1c   : > { %v380_v16 = vld [vmem:[%s1246_s18 + $0x30] sm:$0xff]  ;;  %v381_v18 = vld [vmem:[%s1246_s18 + $0x38] sm:$0xff]  ;;  %v382_v20 = vld [vmem:[%s1246_s18 + $0x40] sm:$0xff] }
  0x1d   : > { %v361_v17 = vld [vmem:[%s1251_s24 + $0x30] sm:$0xff]  ;;  %v362_v19 = vld [vmem:[%s1251_s24 + $0x38] sm:$0xff]  ;;  %v363_v21 = vld [vmem:[%s1251_s24 + $0x40] sm:$0xff]  ;;  %727 = vmatpush.msra.mxu2 %v655_v33 }
  0x1e   : > { %v383_v22 = vld [vmem:[%s1246_s18 + $0x48] sm:$0xff]  ;;  %v384_v24 = vld [vmem:[%s1246_s18 + $0x50] sm:$0xff]  ;;  %v385_v26 = vld [vmem:[%s1246_s18 + $0x58] sm:$0xff] }
  0x1f   : > { %v364_v23 = vld [vmem:[%s1251_s24 + $0x48] sm:$0xff]  ;;  %v365_v25 = vld [vmem:[%s1251_s24 + $0x50] sm:$0xff]  ;;  %v366_v27 = vld [vmem:[%s1251_s24 + $0x58] sm:$0xff] }
  0x20   : > { %v386_v29 = vld [vmem:[%s1246_s18 + $0x60] sm:$0xff]  ;;  %v387_v34 = vld [vmem:[%s1246_s18 + $0x68] sm:$0xff]  ;;  %v388_v36 = vld [vmem:[%s1246_s18 + $0x70] sm:$0xff] }
  0x21   : > { %958 = vmatmul.msk.f32.gmra.mxu0 %vm391_vm0, %v375_v6  ;;  %v367_v30 = vld [vmem:[%s1251_s24 + $0x60] sm:$0xff]  ;;  %v368_v35 = vld [vmem:[%s1251_s24 + $0x68] sm:$0xff]  ;;  %v369_v37 = vld [vmem:[%s1251_s24 + $0x70] sm:$0xff] }
  0x22   : > { %v389_v38 = vld [vmem:[%s1246_s18 + $0x78] sm:$0xff]  ;;  %v1332_v40 = vld [vmem:[%s1425_s4] ss:$0 sm:$0xff]  ;;  %s1079_s18 = sshra.s32 %s883_s17, 4  ;;  %s1080_s18 = int_to_ptr.hbm [resolvable:$true] %s1079_s18 }
  0x23   : > { %974 = vmatmul.msk.f32.gmra.mxu1 %vm505_vm1, %v356_v7  ;;  %v370_v39 = vld [vmem:[%s1251_s24 + $0x78] sm:$0xff]  ;;  %s1081_s23 = scalar_lea.hbm %s1080_s18, 1  ;;  %p1086_p0 = scmp.lt.s32.totalorder %s1080_s18, %s1430_s9 }
  0x24   : > { %p1082_p11 = scmp.ne.s32.totalorder %s1080_s18, %s1081_s23  ;;  %p1087_p1 = scmp.lt.s32.totalorder %s1085_s8, %s1081_s23 }
  0x26   : > { %p1083_p12 = pnand %p1082_p11, %p1220_p5  ;;  %p1088_p2 = por %p1087_p1, %p1086_p0 }
  0x28   : > { %p1084_p13 = pneg %p1083_p12 }
  0x29   : > { %959 = vmatmul.msk.f32.gmra.mxu0 %vm391_vm0, %v376_v8 }
  0x2a   : > { %p1089_p3 = pnand %p1088_p2, %p1084_p13 }
  0x2b   : > { %975 = vmatmul.msk.f32.gmra.mxu1 %vm505_vm1, %v357_v9 }
  0x31   : > { %960 = vmatmul.msk.f32.gmra.mxu0 %vm391_vm0, %v377_v10 }
  0x33   : > { %976 = vmatmul.msk.f32.gmra.mxu1 %vm505_vm1, %v358_v11 }
  0x39   : > { %961 = vmatmul.msk.f32.gmra.mxu0 %vm391_vm0, %v378_v12 }
  0x3b   : > { %977 = vmatmul.msk.f32.gmra.mxu1 %vm505_vm1, %v359_v13 }
  0x41   : > { %962 = vmatmul.msk.f32.gmra.mxu0 %vm391_vm0, %v379_v14 }
  0x43   : > { %978 = vmatmul.msk.f32.gmra.mxu1 %vm505_vm1, %v360_v15 }
  0x49   : > { %963 = vmatmul.msk.f32.gmra.mxu0 %vm391_vm0, %v380_v16 }
  0x4b   : > { %979 = vmatmul.msk.f32.gmra.mxu1 %vm505_vm1, %v361_v17 }
  0x51   : > { %964 = vmatmul.msk.f32.gmra.mxu0 %vm391_vm0, %v381_v18 }
  0x53   : > { %980 = vmatmul.msk.f32.gmra.mxu1 %vm505_vm1, %v362_v19 }
  0x59   : > { %965 = vmatmul.msk.f32.gmra.mxu0 %vm391_vm0, %v382_v20 }
  0x5b   : > { %981 = vmatmul.msk.f32.gmra.mxu1 %vm505_vm1, %v363_v21 }
  0x61   : > { %966 = vmatmul.msk.f32.gmra.mxu0 %vm391_vm0, %v383_v22 }
  0x63   : > { %982 = vmatmul.msk.f32.gmra.mxu1 %vm505_vm1, %v364_v23 }
  0x69   : > { %967 = vmatmul.msk.f32.gmra.mxu0 %vm391_vm0, %v384_v24 }
  0x6b   : > { %983 = vmatmul.msk.f32.gmra.mxu1 %vm505_vm1, %v365_v25 }
  0x71   : > { %968 = vmatmul.msk.f32.gmra.mxu0 %vm391_vm0, %v385_v26 }
  0x73   : > { %984 = vmatmul.msk.f32.gmra.mxu1 %vm505_vm1, %v366_v27 }
  0x79   : > { %969 = vmatmul.msk.f32.gmra.mxu0 %vm391_vm0, %v386_v29 }
  0x7b   : > { %985 = vmatmul.msk.f32.gmra.mxu1 %vm505_vm1, %v367_v30 }
  0x81   : > { %970 = vmatmul.msk.f32.gmra.mxu0 %vm391_vm0, %v387_v34 }
  0x83   : > { %986 = vmatmul.msk.f32.gmra.mxu1 %vm505_vm1, %v368_v35 }
  0x89   : > { %971 = vmatmul.msk.f32.gmra.mxu0 %vm391_vm0, %v388_v36 }
  0x8b   : > { %987 = vmatmul.msk.f32.gmra.mxu1 %vm505_vm1, %v369_v37 }
  0x91   : > { %972 = vmatmul.msk.f32.gmra.mxu0 %vm391_vm0, %v389_v38 }
  0x93   : > { %988 = vmatmul.msk.f32.gmra.mxu1 %vm505_vm1, %v370_v39 }
  0x96   : > { %v457_v41 = vpop.f32.mrf.mxu0 }
  0x98   : > { %v571_v42 = vpop.f32.mrf.mxu1 }
  0x99   : > { %v572_v43 = vadd.f32 %v571_v42, %v457_v41 }
  0x9b   : > { %v623_v44 = vadd.f32 %v1332_v40, %v572_v43 }
  0x9d   : > { %v639_v45 = vmax.f32 %v623_v44, 0.0 }
  0x9e   : > { %v460_v46 = vpop.f32.mrf.mxu0 }
  0x9f   : > { %989 = vmatmul.msk.f32.vlgmr.msra.gmra.mxu2 %vm663_vm2, %v639_v45 }
  0xa0   : > { %v574_v47 = vpop.f32.mrf.mxu1 }
  0xa1   : > { %v575_v48 = vadd.f32 %v574_v47, %v460_v46 }
  0xa3   : > { %v624_v49 = vadd.f32 %v1332_v40, %v575_v48 }
  0xa5   : > { %v640_v50 = vmax.f32 %v624_v49, 0.0 }
  0xa6   : > { %v463_v51 = vpop.f32.mrf.mxu0 }
  0xa7   : > { %990 = vmatmul.msk.f32.gmra.mxu2 %vm663_vm2, %v640_v50 }
  0xa8   : > { %v577_v52 = vpop.f32.mrf.mxu1 }
  0xa9   : > { %v578_v53 = vadd.f32 %v577_v52, %v463_v51 }
  0xab   : > { %v625_v54 = vadd.f32 %v1332_v40, %v578_v53 }
  0xad   : > { %v641_v55 = vmax.f32 %v625_v54, 0.0 }
  0xae   : > { %v466_v56 = vpop.f32.mrf.mxu0 }
  0xaf   : > { %991 = vmatmul.msk.f32.gmra.mxu2 %vm663_vm2, %v641_v55 }
  0xb0   : > { %v580_v57 = vpop.f32.mrf.mxu1 }
  0xb1   : > { %v581_v58 = vadd.f32 %v580_v57, %v466_v56 }
  0xb3   : > { %v626_v59 = vadd.f32 %v1332_v40, %v581_v58 }
  0xb5   : > { %v642_v60 = vmax.f32 %v626_v59, 0.0 }
  0xb6   : > { %v469_v61 = vpop.f32.mrf.mxu0 }
  0xb7   : > { %992 = vmatmul.msk.f32.gmra.mxu2 %vm663_vm2, %v642_v60 }
  0xb8   : > { %v583_v62 = vpop.f32.mrf.mxu1 }
  0xb9   : > { %v584_v63 = vadd.f32 %v583_v62, %v469_v61 }
  0xbb   : > { %v627_v0 = vadd.f32 %v1332_v40, %v584_v63 }
  0xbd   : > { %v643_v1 = vmax.f32 %v627_v0, 0.0 }
  0xbe   : > { %v472_v2 = vpop.f32.mrf.mxu0 }
  0xbf   : > { %993 = vmatmul.msk.f32.gmra.mxu2 %vm663_vm2, %v643_v1 }
  0xc0   : > { %v586_v3 = vpop.f32.mrf.mxu1 }
  0xc1   : > { %v587_v4 = vadd.f32 %v586_v3, %v472_v2 }
  0xc3   : > { %v628_v5 = vadd.f32 %v1332_v40, %v587_v4 }
  0xc5   : > { %v644_v6 = vmax.f32 %v628_v5, 0.0 }
  0xc6   : > { %v475_v7 = vpop.f32.mrf.mxu0 }
  0xc7   : > { %994 = vmatmul.msk.f32.gmra.mxu2 %vm663_vm2, %v644_v6 }
  0xc8   : > { %v589_v8 = vpop.f32.mrf.mxu1 }
  0xc9   : > { %v590_v9 = vadd.f32 %v589_v8, %v475_v7 }
  0xcb   : > { %v629_v10 = vadd.f32 %v1332_v40, %v590_v9 }
  0xcd   : > { %v645_v11 = vmax.f32 %v629_v10, 0.0 }
  0xce   : > { %v478_v12 = vpop.f32.mrf.mxu0 }
  0xcf   : > { %995 = vmatmul.msk.f32.gmra.mxu2 %vm663_vm2, %v645_v11 }
  0xd0   : > { %v592_v13 = vpop.f32.mrf.mxu1 }
  0xd1   : > { %v593_v14 = vadd.f32 %v592_v13, %v478_v12 }
  0xd3   : > { %v630_v15 = vadd.f32 %v1332_v40, %v593_v14 }
  0xd5   : > { %v646_v16 = vmax.f32 %v630_v15, 0.0 }
  0xd6   : > { %v481_v17 = vpop.f32.mrf.mxu0 }
  0xd7   : > { %996 = vmatmul.msk.f32.gmra.mxu2 %vm663_vm2, %v646_v16 }
  0xd8   : > { %v595_v18 = vpop.f32.mrf.mxu1 }
  0xd9   : > { %v596_v19 = vadd.f32 %v595_v18, %v481_v17 }
  0xdb   : > { %v631_v20 = vadd.f32 %v1332_v40, %v596_v19 }
  0xdd   : > { %v647_v21 = vmax.f32 %v631_v20, 0.0 }
  0xde   : > { %v484_v22 = vpop.f32.mrf.mxu0 }
  0xdf   : > { %997 = vmatmul.msk.f32.gmra.mxu2 %vm663_vm2, %v647_v21 }
  0xe0   : > { %v598_v23 = vpop.f32.mrf.mxu1 }
  0xe1   : > { %v599_v24 = vadd.f32 %v598_v23, %v484_v22 }
  0xe3   : > { %v632_v25 = vadd.f32 %v1332_v40, %v599_v24 }
  0xe5   : > { %v648_v26 = vmax.f32 %v632_v25, 0.0 }
  0xe6   : > { %v487_v27 = vpop.f32.mrf.mxu0 }
  0xe7   : > { %998 = vmatmul.msk.f32.gmra.mxu2 %vm663_vm2, %v648_v26 }
  0xe8   : > { %v601_v28 = vpop.f32.mrf.mxu1 }
  0xe9   : > { %v602_v29 = vadd.f32 %v601_v28, %v487_v27 }
  0xeb   : > { %v633_v30 = vadd.f32 %v1332_v40, %v602_v29 }
  0xed   : > { %v649_v31 = vmax.f32 %v633_v30, 0.0 }
  0xee   : > { %v490_v32 = vpop.f32.mrf.mxu0 }
  0xef   : > { %999 = vmatmul.msk.f32.gmra.mxu2 %vm663_vm2, %v649_v31 }
  0xf0   : > { %v604_v33 = vpop.f32.mrf.mxu1 }
  0xf1   : > { %v605_v34 = vadd.f32 %v604_v33, %v490_v32 }
  0xf3   : > { %v634_v35 = vadd.f32 %v1332_v40, %v605_v34 }
  0xf5   : > { %v650_v36 = vmax.f32 %v634_v35, 0.0 }
  0xf6   : > { %v493_v37 = vpop.f32.mrf.mxu0 }
  0xf7   : > { %1000 = vmatmul.msk.f32.gmra.mxu2 %vm663_vm2, %v650_v36 }
  0xf8   : > { %v607_v38 = vpop.f32.mrf.mxu1 }
  0xf9   : > { %v608_v39 = vadd.f32 %v607_v38, %v493_v37 }
  0xfb   : > { %v635_v41 = vadd.f32 %v1332_v40, %v608_v39 }
  0xfd   : > { %v651_v42 = vmax.f32 %v635_v41, 0.0 }
  0xfe   : > { %v496_v43 = vpop.f32.mrf.mxu0 }
  0xff   : > { %1001 = vmatmul.msk.f32.gmra.mxu2 %vm663_vm2, %v651_v42 }
 0x100   : > { %v610_v44 = vpop.f32.mrf.mxu1 }
 0x101   : > { %v611_v45 = vadd.f32 %v610_v44, %v496_v43  ;;  %v793_v43 = vld [vmem:[%s1428_s7] sm:$0xff]  ;;  %v866_v44 = vstv %s865_s26 }
 0x103   : > { %v636_v46 = vadd.f32 %v1332_v40, %v611_v45 }
 0x105   : > { %v652_v47 = vmax.f32 %v636_v46, 0.0 }
 0x106   : > { %v499_v48 = vpop.f32.mrf.mxu0 }
 0x107   : > { %1002 = vmatmul.msk.f32.gmra.mxu2 %vm663_vm2, %v652_v47 }
 0x108   : > { %v613_v49 = vpop.f32.mrf.mxu1 }
 0x109   : > { %v614_v50 = vadd.f32 %v613_v49, %v499_v48 }
 0x10b   : > { %v637_v51 = vadd.f32 %v1332_v40, %v614_v50 }
 0x10d   : > { %v653_v52 = vmax.f32 %v637_v51, 0.0 }
 0x10e   : > { %v502_v53 = vpop.f32.mrf.mxu0 }
 0x10f   : > { %1003 = vmatmul.msk.f32.gmra.mxu2 %vm663_vm2, %v653_v52 }
 0x110   : > { %v616_v54 = vpop.f32.mrf.mxu1 }
 0x111   : > { %v617_v55 = vadd.f32 %v616_v54, %v502_v53 }
 0x113   : > { %v638_v56 = vadd.f32 %v1332_v40, %v617_v55  ;;  %v1064_v40 = vld [vmem:[%s1427_s6] ss:$0 sm:$0xff] }
 0x115   : > { %v654_v57 = vmax.f32 %v638_v56, 0.0 }
 0x117   : > { %1004 = vmatmul.msk.f32.gmra.mxu2 %vm663_vm2, %v654_v57 }
 0x122   : > { %v729_v58 = vpop.f32.mrf.mxu2 }
 0x123   : > { %v730_v39 = vadd.f32 %v1064_v40, %v729_v58 }
 0x125   : > { %v777_v42 = vmax.f32 %v730_v39, 0.0 }
 0x12a   : > { %v732_v59 = vpop.f32.mrf.mxu2 }
 0x12b   : > { %v733_v37 = vadd.f32 %v1064_v40, %v732_v59 }
 0x12d   : > { %v778_v41 = vmax.f32 %v733_v37, 0.0 }
 0x132   : > { %v735_v60 = vpop.f32.mrf.mxu2 }
 0x133   : > { %v736_v35 = vadd.f32 %v1064_v40, %v735_v60 }
 0x135   : > { %v779_v38 = vmax.f32 %v736_v35, 0.0 }
 0x13a   : > { %v738_v61 = vpop.f32.mrf.mxu2 }
 0x13b   : > { %v739_v33 = vadd.f32 %v1064_v40, %v738_v61 }
 0x13d   : > { %v780_v36 = vmax.f32 %v739_v33, 0.0 }
 0x142   : > { %v741_v62 = vpop.f32.mrf.mxu2 }
 0x143   : > { %v742_v31 = vadd.f32 %v1064_v40, %v741_v62 }
 0x145   : > { %v781_v34 = vmax.f32 %v742_v31, 0.0 }
 0x14a   : > { %v744_v63 = vpop.f32.mrf.mxu2 }
 0x14b   : > { %v745_v29 = vadd.f32 %v1064_v40, %v744_v63 }
 0x14d   : > { %v782_v32 = vmax.f32 %v745_v29, 0.0 }
 0x152   : > { %v747_v0 = vpop.f32.mrf.mxu2 }
 0x153   : > { %v748_v27 = vadd.f32 %v1064_v40, %v747_v0 }
 0x155   : > { %v783_v30 = vmax.f32 %v748_v27, 0.0 }
 0x15a   : > { %v750_v1 = vpop.f32.mrf.mxu2 }
 0x15b   : > { %v751_v25 = vadd.f32 %v1064_v40, %v750_v1 }
 0x15d   : > { %v784_v28 = vmax.f32 %v751_v25, 0.0 }
 0x162   : > { %v753_v2 = vpop.f32.mrf.mxu2 }
 0x163   : > { %v754_v23 = vadd.f32 %v1064_v40, %v753_v2 }
 0x165   : > { %v785_v26 = vmax.f32 %v754_v23, 0.0 }
 0x16a   : > { %v756_v3 = vpop.f32.mrf.mxu2 }
 0x16b   : > { %v757_v21 = vadd.f32 %v1064_v40, %v756_v3 }
 0x16d   : > { %v786_v24 = vmax.f32 %v757_v21, 0.0 }
 0x172   : > { %v759_v4 = vpop.f32.mrf.mxu2 }
 0x173   : > { %v760_v19 = vadd.f32 %v1064_v40, %v759_v4 }
 0x175   : > { %v787_v22 = vmax.f32 %v760_v19, 0.0 }
 0x17a   : > { %v762_v5 = vpop.f32.mrf.mxu2 }
 0x17b   : > { %v763_v17 = vadd.f32 %v1064_v40, %v762_v5 }
 0x17d   : > { %v788_v20 = vmax.f32 %v763_v17, 0.0 }
 0x182   : > { %v765_v6 = vpop.f32.mrf.mxu2 }
 0x183   : > { %v766_v15 = vadd.f32 %v1064_v40, %v765_v6 }
 0x185   : > { %v789_v18 = vmax.f32 %v766_v15, 0.0 }
 0x18a   : > { %v768_v7 = vpop.f32.mrf.mxu2 }
 0x18b   : > { %v769_v13 = vadd.f32 %v1064_v40, %v768_v7 }
 0x18d   : > { %v790_v16 = vmax.f32 %v769_v13, 0.0 }
 0x192   : > { %v771_v8 = vpop.f32.mrf.mxu2 }
 0x193   : > { %v772_v11 = vadd.f32 %v1064_v40, %v771_v8 }
 0x195   : > { %v791_v14 = vmax.f32 %v772_v11, 0.0 }
 0x19a   : > { %v774_v9 = vpop.f32.mrf.mxu2 }
 0x19b   : > { %v775_v10 = vadd.f32 %v1064_v40, %v774_v9 }
 0x19d   : > { %v792_v12 = vmax.f32 %v775_v10, 0.0 }
 0x19f   : > { %1005 = vmatpush.xpose.msk.msra.mxu3 %vm663_vm2, %v792_v12 }
 0x1a3   : > { %1006 = vmatpush.xpose.msk.msra.mxu3 %vm663_vm2, %v791_v14 }
 0x1a7   : > { %1007 = vmatpush.xpose.msk.msra.mxu3 %vm663_vm2, %v790_v16 }
 0x1ab   : > { %1008 = vmatpush.xpose.msk.msra.mxu3 %vm663_vm2, %v789_v18 }
 0x1af   : > { %1009 = vmatpush.xpose.msk.msra.mxu3 %vm663_vm2, %v788_v20 }
 0x1b3   : > { %1010 = vmatpush.xpose.msk.msra.mxu3 %vm663_vm2, %v787_v22 }
 0x1b7   : > { %1011 = vmatpush.xpose.msk.msra.mxu3 %vm663_vm2, %v786_v24 }
 0x1bb   : > { %1012 = vmatpush.xpose.msk.msra.mxu3 %vm663_vm2, %v785_v26 }
 0x1bf   : > { %1013 = vmatpush.xpose.msk.msra.mxu3 %vm663_vm2, %v784_v28 }
 0x1c3   : > { %1014 = vmatpush.xpose.msk.msra.mxu3 %vm663_vm2, %v783_v30 }
 0x1c7   : > { %1015 = vmatpush.xpose.msk.msra.mxu3 %vm663_vm2, %v782_v32 }
 0x1cb   : > { %1016 = vmatpush.xpose.msk.msra.mxu3 %vm663_vm2, %v781_v34 }
 0x1cf   : > { %1017 = vmatpush.xpose.msk.msra.mxu3 %vm663_vm2, %v780_v36 }
 0x1d3   : > { %1018 = vmatpush.xpose.msk.msra.mxu3 %vm663_vm2, %v779_v38 }
 0x1d7   : > { %1019 = vmatpush.xpose.msk.msra.mxu3 %vm663_vm2, %v778_v41 }
 0x1db   : > { %1020 = vmatpush.xpose.msk.msra.mxu3 %vm663_vm2, %v777_v42 }
 0x1de   : > { %1021 = vmatmul.msk.f32.vlgmr.msra.gmra.mxu3 %vm663_vm2, %v793_v43 }
 0x261   : > { %v862_v45 = vpop.f32.mrf.mxu3 }
 0x262   : > { %v867_v46 = vadd.f32 %v866_v44, %v862_v45 }
 0x264   : > { %868 = vst [vmem:[%s342_s10] sm:$0x1] %v867_v46 }
 0x265   : > { %1092 = shalt.err (!%p1089_p3)
}
 0x266   : > { %1024 = dma.vmem_to_hbm [thread:$0]  (%p1220_p5), %s881_s15, 16, %s883_s17, %s870_s22  }
 0x267 PF: > { %p1030_p4 = scmp.ge.s32.totalorder %s1127_s14, 2  ;;  %s894_s27 = sand.u32 1, %s1115_s11  }
 0x268   : > { %s895_s29 = scalar_lea.sflag [#allocation4], %s894_s27 }
 0x269   : > { %p1027_p7 = pnand %p1030_p4, %p1224_p6 }
 0x26b   : > { %p1028_p8 = pneg %p1027_p7 }
 0x26d   : > { %1110 = dma.done.wait (%p1028_p8), %s895_s29, 16  }
 0x26e   : > { %1112 = vsyncadd (%p1028_p8), %s895_s29, 4294967280  ;;  %p20_p9 = scmp.ge.s32.totalorder %s1207_s16, 4   ;;  %s1433_s11 = smov %s1119_s12 }
 0x26f   : > { %s1434_s12 = smov %s1123_s13  ;;  %s1435_s13 = smov %s1218_s19 }
 0x270   : > { %s1436_s14 = smov %s1207_s16  ;;  %22 = sbr.rel (!%p20_p9) target bundleno = 5 (0x5), region = 94 }
 0x275   :  { %900 = vsyncpa [#allocation4], 1 }
 0x276   :  { %902 = vsyncpa [#allocation4 + $0x1], 1 }

</bundles_post_ra>
